<compile_context>
chip_gen: v7x
topology: tpu7x:2x2x1
jax: 0.10.0
libtpu: 0.0.40
codegen_flags: <defaults>
</compile_context>

<pallas_src>
import functools

import jax
import jax.numpy as jnp
from jax.experimental import pallas as pl
from jax.experimental.pallas import tpu as pltpu


# ------------------------------ tiling helper --------------------------------

def _pick_row_block(rows, bytes_per_row, budget_bytes=20 << 20):
    """Largest divisor of `rows` that is a multiple of 8 (TPU sublane rule) and
    keeps the per-step VMEM footprint (`bytes_per_row * row_block`) under
    `budget_bytes`.  Falls back to the full extent (always a legal block shape)
    if no such divisor exists."""
    cap = max(8, budget_bytes // max(1, bytes_per_row))
    best = rows
    limit = min(rows, cap)
    for d in range(8, limit + 1, 8):
        if rows % d == 0:
            best = d
    return best


# ------------------ fused similarity (2x masked MSE) kernel -------------------

def _fused_similarity_kernel(wm_ref, wc_ref, mf_ref, cf_ref, out_ref,
                             acc_sse_pos, acc_n_pos, acc_sse_neg, acc_n_neg,
                             *, img_h, mw, mask_contrast, mask_edge, row_block):
    inner = pl.program_id(1)
    n_inner = pl.num_programs(1)
    # Global block index along the flattened row axis.
    block_idx = pl.program_id(0) * n_inner + inner

    @pl.when(inner == 0)
    def _init():
        acc_sse_pos[...] = jnp.zeros_like(acc_sse_pos)
        acc_n_pos[...] = jnp.zeros_like(acc_n_pos)
        acc_sse_neg[...] = jnp.zeros_like(acc_sse_neg)
        acc_n_neg[...] = jnp.zeros_like(acc_n_neg)

    # In-kernel cast (inputs may be bf16); accumulate in f32.
    wm = wm_ref[...].astype(jnp.float32)
    wc = wc_ref[...].astype(jnp.float32)
    mf = mf_ref[...].astype(jnp.float32)
    cf = cf_ref[...].astype(jnp.float32)
    nrows, ncols = wm.shape  # static (row_block, W)

    # Edge mask computed in-kernel from global (h, w) coordinates.
    if mask_edge:
        if mw > 0:
            row_it = jax.lax.broadcasted_iota(jnp.int32, (nrows, ncols), 0)
            col_it = jax.lax.broadcasted_iota(jnp.int32, (nrows, ncols), 1)
            h = (block_idx * row_block + row_it) % img_h
            edge = ((h >= mw) & (h < img_h - mw)
                    & (col_it >= mw) & (col_it < ncols - mw)).astype(jnp.float32)
        else:
            # Matches torch: edge_mask[:, :, 0:-0, 0:-0] = True is a no-op -> all False.
            edge = jnp.zeros((nrows, ncols), jnp.float32)
    else:
        edge = jnp.ones((nrows, ncols), jnp.float32)

    if mask_contrast:
        m_pos = edge * (mf - cf < 0.05).astype(jnp.float32)
        m_neg = edge * (mf - wc < 0.05).astype(jnp.float32)
    else:
        m_pos = edge
        m_neg = edge

    d_pos = wm - cf   # preds=warped_mask,     target=contrast_frame
    d_neg = wc - mf   # preds=warped_contrast, target=mask_frame

    # Pure-VPU elementwise accumulation; cross-lane reduce deferred to epilogue.
    acc_sse_pos[...] += d_pos * d_pos * m_pos
    acc_n_pos[...] += m_pos
    acc_sse_neg[...] += d_neg * d_neg * m_neg
    acc_n_neg[...] += m_neg

    @pl.when(inner == n_inner - 1)
    def _finalize():
        s0 = jnp.sum(acc_sse_pos[...])
        s1 = jnp.sum(acc_n_pos[...])
        s2 = jnp.sum(acc_sse_neg[...])
        s3 = jnp.sum(acc_n_neg[...])
        lane = jax.lax.broadcasted_iota(jnp.int32, (8, 128), 1)
        vals = jnp.where(lane == 0, s0,
               jnp.where(lane == 1, s1,
               jnp.where(lane == 2, s2,
               jnp.where(lane == 3, s3, 0.0))))
        out_ref[0] = vals


def fused_similarity_losses(warped_mask, warped_contrast, mask_frame,
                            contrast_frame, *, mask_contrast, mask_edge,
                            row_block=None):
    """Returns (pos_similarity_loss, neg_similarity_loss) in one fused pass."""
    assert (warped_mask.shape == warped_contrast.shape
            == mask_frame.shape == contrast_frame.shape)
    B, C, H, W = mask_frame.shape
    mw = int(W / 16)
    R = B * C * H

    # Free (contiguous) reshape to a lane-dense 2D layout; row index % H == h.
    flat = lambda x: x.reshape(R, W)
    operands = (flat(warped_mask), flat(warped_contrast),
                flat(mask_frame), flat(contrast_frame))

    itemsize = mask_frame.dtype.itemsize
    if row_block is None:
        # 4 double-buffered input tiles + 4 f32 accumulators per row.
        bytes_per_row = (4 * 2 * itemsize + 4 * 4) * W
        row_block = _pick_row_block(R, bytes_per_row)
    assert R % row_block == 0
    assert row_block % 8 == 0 or row_block == R
    n_blocks = R // row_block

    # Leading 'parallel' axis -> both v7x TensorCores compute disjoint partial sums.
    n_par = 2 if (n_blocks >= 2 and n_blocks % 2 == 0) else 1
    inner = n_blocks // n_par

    kernel = functools.partial(
        _fused_similarity_kernel, img_h=H, mw=mw,
        mask_contrast=mask_contrast, mask_edge=mask_edge, row_block=row_block)

    in_spec = pl.BlockSpec((row_block, W), lambda c, i: (c * inner + i, 0))
    sums = pl.pallas_call(
        kernel,
        out_shape=jax.ShapeDtypeStruct((n_par, 8, 128), jnp.float32),
        grid=(n_par, inner),
        in_specs=[in_spec, in_spec, in_spec, in_spec],
        out_specs=pl.BlockSpec((1, 8, 128), lambda c, i: (c, 0, 0)),
        scratch_shapes=[pltpu.VMEM((row_block, W), jnp.float32)] * 4,
        compiler_params=pltpu.CompilerParams(
            dimension_semantics=("parallel", "arbitrary"),
            vmem_limit_bytes=32 * 1024 * 1024),
        cost_estimate=pl.CostEstimate(
            flops=20 * R * W, transcendentals=0,
            bytes_accessed=4 * R * W * itemsize + n_par * 8 * 128 * 4),
    )(*operands)

    totals = jnp.sum(sums[:, 0, :4], axis=0)   # (4,) cross-core combine
    pos = totals[0] / totals[1]
    neg = totals[2] / totals[3]
    return pos, neg


# ----------------------------- Grad('l2') kernel ------------------------------

def _grad_l2_kernel(f_ref, out_ref, acc_dx, acc_dy, *, lo, hi_r, hi_c):
    i = pl.program_id(0)

    @pl.when(i == 0)
    def _init():
        acc_dx[...] = jnp.zeros_like(acc_dx)
        acc_dy[...] = jnp.zeros_like(acc_dy)

    f = f_ref[0].astype(jnp.float32)           # (H, W) one (batch, channel) slice
    H, W = f.shape

    # Neighbour-shifted copies at full (H, W) shape; wrap column/row masked below.
    f_xp1 = jnp.concatenate([f[:, 1:], f[:, -1:]], axis=1)   # f[h, w+1]
    f_yp1 = jnp.concatenate([f[1:, :], f[-1:, :]], axis=0)   # f[h+1, w]
    dx = f_xp1 - f
    dy = f_yp1 - f

    # mask_edge crop handled in-kernel (no non-aligned wrapper slice).
    row = jax.lax.broadcasted_iota(jnp.int32, (H, W), 0)
    col = jax.lax.broadcasted_iota(jnp.int32, (H, W), 1)
    in_r = (row >= lo) & (row < hi_r)
    in_c = (col >= lo) & (col < hi_c)
    mx = (in_r & in_c & (col < hi_c - 1)).astype(jnp.float32)
    my = (in_r & in_c & (row < hi_r - 1)).astype(jnp.float32)

    acc_dx[...] += dx * dx * mx
    acc_dy[...] += dy * dy * my

    @pl.when(i == pl.num_programs(0) - 1)
    def _finalize():
        out_ref[0, 0] = jnp.sum(acc_dx[...])
        out_ref[0, 1] = jnp.sum(acc_dy[...])


def grad_l2_loss(flow, *, crop=0, loss_mult=None):
    """Grad('l2').loss(flow[:, :, crop:-crop, crop:-crop], loss_mult)."""
    B, C, H, W = flow.shape
    lo = crop
    hi_r, hi_c = H - crop, W - crop
    Hc, Wc = hi_r - lo, hi_c - lo
    if Hc < 2 or Wc < 2:
        # Degenerate crop: the reference takes the mean of an empty tensor -> NaN.
        g = jnp.float32(jnp.nan)
        return g * loss_mult if loss_mult is not None else g

    flow3 = flow.reshape(B * C, H, W)
    kernel = functools.partial(_grad_l2_kernel, lo=lo, hi_r=hi_r, hi_c=hi_c)
    sums = pl.pallas_call(
        kernel,
        out_shape=jax.ShapeDtypeStruct((1, 2), jnp.float32),
        grid=(B * C,),
        in_specs=[pl.BlockSpec((1, H, W), lambda i: (i, 0, 0))],
        out_specs=pl.BlockSpec(memory_space=pltpu.MemorySpace.SMEM),
        scratch_shapes=[pltpu.VMEM((H, W), jnp.float32),
                        pltpu.VMEM((H, W), jnp.float32)],
        compiler_params=pltpu.CompilerParams(
            dimension_semantics=("arbitrary",),
            vmem_limit_bytes=32 * 1024 * 1024),
        cost_estimate=pl.CostEstimate(
            flops=10 * B * C * H * W, transcendentals=0,
            bytes_accessed=flow.size * flow.dtype.itemsize + 8),
    )(flow3)

    n_dx = B * C * Hc * (Wc - 1)
    n_dy = B * C * (Hc - 1) * Wc
    d = sums[0, 0] / n_dx + sums[0, 1] / n_dy
    g = d / 2.0
    if loss_mult is not None:
        g = g * loss_mult
    return g


# -------------------------------- VMLoss glue ---------------------------------

def vm_loss(model_in, model_out, *, lambda_param, int_downsize=None,
            registration=False, bidir=False, mask_contrast=False,
            mask_edge=False, sim_row_block=None):
    """JAX/Pallas equivalent of VMLoss.forward with image_loss='mse'."""
    warped_mask, flow = model_out[0], model_out[1]
    warped_contrast = model_out[2]
    mask_frame, contrast_frame = model_in[0], model_in[1]

    pos_loss, neg_loss = fused_similarity_losses(
        warped_mask, warped_contrast, mask_frame, contrast_frame,
        mask_contrast=mask_contrast, mask_edge=mask_edge,
        row_block=sim_row_block)
    lossd = {"pos_similarity_loss": pos_loss,
             "neg_similarity_loss": neg_loss}

    if not registration:
        mw = int(mask_frame.shape[-1] / 16)
        mw2 = int(mw / int_downsize)
        if mask_edge and mw2 == 0:
            # torch slice [0:-0] yields an empty tensor -> mean of empty = NaN.
            lossd["smoothness_loss"] = jnp.float32(jnp.nan)
        else:
            lossd["smoothness_loss"] = grad_l2_loss(
                flow, crop=(mw2 if mask_edge else 0), loss_mult=int_downsize)

    loss = pos_loss
    if bidir:
        loss = 0.5 * pos_loss + 0.5 * neg_loss
    if not registration and lambda_param != 0:
        loss = (1 - lambda_param) * loss + lambda_param * lossd["smoothness_loss"]
    lossd["loss"] = loss
    return lossd


# ------------------------- pure-JAX reference (check) -------------------------

def _vm_loss_reference(model_in, model_out, *, lambda_param, int_downsize,
                       registration, bidir, mask_contrast, mask_edge):
    warped_mask, flow, warped_contrast = model_out[0], model_out[1], model_out[2]
    mask_frame, contrast_frame = model_in
    mw = int(mask_frame.shape[-1] / 16)

    def mse(p, t, m):
        d = p - t
        return jnp.sum(d * d * m) / jnp.sum(m)

    edge = jnp.ones_like(mask_frame)
    if mask_edge:
        edge = jnp.zeros_like(mask_frame).at[:, :, mw:-mw, mw:-mw].set(1.0)
    cm = jnp.ones_like(mask_frame)
    if mask_contrast:
        cm = (mask_frame - contrast_frame < 0.05).astype(jnp.float32)
    pos = mse(warped_mask, contrast_frame, edge * cm)
    cm = jnp.ones_like(mask_frame)
    if mask_contrast:
        cm = (mask_frame - warped_contrast < 0.05).astype(jnp.float32)
    neg = mse(warped_contrast, mask_frame, edge * cm)
    out = {"pos_similarity_loss": pos, "neg_similarity_loss": neg}
    if not registration:
        mw2 = int(mw / int_downsize)
        f = flow[:, :, mw2:-mw2, mw2:-mw2] if mask_edge else flow
        dy = f[:, :, 1:, :] - f[:, :, :-1, :]
        dx = f[:, :, :, 1:] - f[:, :, :, :-1]
        d = jnp.mean(dx * dx) + jnp.mean(dy * dy)
        out["smoothness_loss"] = d / 2.0 * int_downsize
    loss = pos
    if bidir:
        loss = 0.5 * pos + 0.5 * neg
    if not registration and lambda_param != 0:
        loss = (1 - lambda_param) * loss + lambda_param * out["smoothness_loss"]
    out["loss"] = loss
    return out


# ----------------------------------- main -------------------------------------

if __name__ == "__main__":
    key = jax.random.PRNGKey(0)
    k1, k2, k3, k4, k5 = jax.random.split(key, 5)

    # Small but non-degenerate shapes: mw = 32/16 = 2, flow at 1/int_downsize
    # resolution so the mask_edge crop (mw2 = 1) is valid.
    B, C, H, W = 2, 1, 32, 32
    Hf, Wf = H // 2, W // 2
    mask_frame = jax.random.uniform(k1, (B, C, H, W), dtype=jnp.float32)
    contrast_frame = jax.random.uniform(k2, (B, C, H, W), dtype=jnp.float32)
    warped_mask = jax.random.uniform(k3, (B, C, H, W), dtype=jnp.float32)
    warped_contrast = jax.random.uniform(k4, (B, C, H, W), dtype=jnp.float32)
    flow = jax.random.normal(k5, (B, 2, Hf, Wf), dtype=jnp.float32)

    model_in = (mask_frame, contrast_frame)
    model_out = (warped_mask, flow, warped_contrast)

    kwargs = dict(lambda_param=0.5, int_downsize=2, registration=False,
                  bidir=True, mask_contrast=True, mask_edge=True)

    # sim_row_block=16 forces a (2-parallel x 2-arbitrary) reduction grid even at
    # this tiny size so the accumulate / per-core epilogue path is exercised.
    lossd = vm_loss(model_in, model_out, sim_row_block=16, **kwargs)
    for v in lossd.values():
        jax.block_until_ready(v)

    # Lightweight correctness check against a pure-JAX reference.
    ref = _vm_loss_reference(model_in, model_out, **kwargs)
    for name, r in ref.items():
        got = lossd[name]
        assert jnp.allclose(got, r, rtol=1e-4, atol=1e-5), (name, got, r)

    print("KERNEL_OK")
</pallas_src>

<mosaic_0001>
module attributes {stable_mosaic.version = 11 : i64} {
  func.func @_fused_similarity_kernel(%arg0: i32, %arg1: i32, %arg2: memref<16x32xf32, #tpu.memory_space<vmem>>, %arg3: memref<16x32xf32, #tpu.memory_space<vmem>>, %arg4: memref<16x32xf32, #tpu.memory_space<vmem>>, %arg5: memref<16x32xf32, #tpu.memory_space<vmem>>, %arg6: memref<1x8x128xf32, #tpu.memory_space<vmem>>, %arg7: memref<16x32xf32, #tpu.memory_space<vmem>>, %arg8: memref<16x32xf32, #tpu.memory_space<vmem>>, %arg9: memref<16x32xf32, #tpu.memory_space<vmem>>, %arg10: memref<16x32xf32, #tpu.memory_space<vmem>>) attributes {dimension_semantics = [#tpu.dimension_semantics<parallel>, #tpu.dimension_semantics<arbitrary>], iteration_bounds = array<i64: 2, 2>, scalar_prefetch = 0 : i64, scratch_operands = 4 : i64, tpu.core_type = #tpu.core_type<tc>, window_params = [{transform_indices = @transform_0, window_bounds = array<i64: 16, 32>}, {transform_indices = @transform_1, window_bounds = array<i64: 16, 32>}, {transform_indices = @transform_2, window_bounds = array<i64: 16, 32>}, {transform_indices = @transform_3, window_bounds = array<i64: 16, 32>}, {transform_indices = @transform_4, window_bounds = array<i64: 1, 8, 128>}]} {
    %c2_i32 = arith.constant 2 : i32
    %0 = arith.muli %arg0, %c2_i32 : i32
    %1 = arith.addi %0, %arg1 : i32
    %c0_i32 = arith.constant 0 : i32
    %2 = arith.cmpi eq, %arg1, %c0_i32 : i32
    %3 = arith.extui %2 : i1 to i32
    %c0_i32_0 = arith.constant 0 : i32
    %4 = arith.cmpi ne, %3, %c0_i32_0 : i32
    scf.if %4 {
      %cst_34 = arith.constant 0.000000e+00 : f32
      %76 = vector.broadcast %cst_34 : f32 to vector<16x32xf32>
      %c0_35 = arith.constant 0 : index
      %c0_36 = arith.constant 0 : index
      %77 = vector.load %arg7[%c0_35, %c0_36] : memref<16x32xf32, #tpu.memory_space<vmem>>, vector<16x32xf32>
      tpu.vector_store %arg7[%c0_35, %c0_36], %76 {strides = array<i32>} : memref<16x32xf32, #tpu.memory_space<vmem>>, vector<16x32xf32>,
      %cst_37 = arith.constant 0.000000e+00 : f32
      %78 = vector.broadcast %cst_37 : f32 to vector<16x32xf32>
      %c0_38 = arith.constant 0 : index
      %c0_39 = arith.constant 0 : index
      %79 = vector.load %arg8[%c0_38, %c0_39] : memref<16x32xf32, #tpu.memory_space<vmem>>, vector<16x32xf32>
      tpu.vector_store %arg8[%c0_38, %c0_39], %78 {strides = array<i32>} : memref<16x32xf32, #tpu.memory_space<vmem>>, vector<16x32xf32>,
      %cst_40 = arith.constant 0.000000e+00 : f32
      %80 = vector.broadcast %cst_40 : f32 to vector<16x32xf32>
      %c0_41 = arith.constant 0 : index
      %c0_42 = arith.constant 0 : index
      %81 = vector.load %arg9[%c0_41, %c0_42] : memref<16x32xf32, #tpu.memory_space<vmem>>, vector<16x32xf32>
      tpu.vector_store %arg9[%c0_41, %c0_42], %80 {strides = array<i32>} : memref<16x32xf32, #tpu.memory_space<vmem>>, vector<16x32xf32>,
      %cst_43 = arith.constant 0.000000e+00 : f32
      %82 = vector.broadcast %cst_43 : f32 to vector<16x32xf32>
      %c0_44 = arith.constant 0 : index
      %c0_45 = arith.constant 0 : index
      %83 = vector.load %arg10[%c0_44, %c0_45] : memref<16x32xf32, #tpu.memory_space<vmem>>, vector<16x32xf32>
      tpu.vector_store %arg10[%c0_44, %c0_45], %82 {strides = array<i32>} : memref<16x32xf32, #tpu.memory_space<vmem>>, vector<16x32xf32>,
    } else {
    }
    %c0 = arith.constant 0 : index
    %c0_1 = arith.constant 0 : index
    %5 = vector.load %arg2[%c0, %c0_1] : memref<16x32xf32, #tpu.memory_space<vmem>>, vector<16x32xf32>
    %c0_2 = arith.constant 0 : index
    %c0_3 = arith.constant 0 : index
    %6 = vector.load %arg3[%c0_2, %c0_3] : memref<16x32xf32, #tpu.memory_space<vmem>>, vector<16x32xf32>
    %c0_4 = arith.constant 0 : index
    %c0_5 = arith.constant 0 : index
    %7 = vector.load %arg4[%c0_4, %c0_5] : memref<16x32xf32, #tpu.memory_space<vmem>>, vector<16x32xf32>
    %c0_6 = arith.constant 0 : index
    %c0_7 = arith.constant 0 : index
    %8 = vector.load %arg5[%c0_6, %c0_7] : memref<16x32xf32, #tpu.memory_space<vmem>>, vector<16x32xf32>
    %9 = tpu.iota {dimensions = array<i32: 0>} : vector<16x32xi32>
    %10 = tpu.iota {dimensions = array<i32: 1>} : vector<16x32xi32>
    %c16_i32 = arith.constant 16 : i32
    %11 = arith.muli %1, %c16_i32 : i32
    %12 = vector.broadcast %11 : i32 to vector<16x32xi32>
    %13 = arith.addi %12, %9 : vector<16x32xi32>
    %c32_i32 = arith.constant 32 : i32
    %c0_i32_8 = arith.constant 0 : i32
    %14 = arith.cmpi eq, %c32_i32, %c0_i32_8 : i32
    %c1_i32 = arith.constant 1 : i32
    %15 = arith.select %14, %c1_i32, %c32_i32 : i32
    %16 = vector.broadcast %15 : i32 to vector<16x32xi32>
    %17 = arith.remsi %13, %16 : vector<16x32xi32>
    %c0_i32_9 = arith.constant 0 : i32
    %18 = vector.broadcast %c0_i32_9 : i32 to vector<16x32xi32>
    %19 = arith.cmpi ne, %17, %18 : vector<16x32xi32>
    %c0_i32_10 = arith.constant 0 : i32
    %20 = vector.broadcast %c0_i32_10 : i32 to vector<16x32xi32>
    %21 = arith.cmpi slt, %17, %20 : vector<16x32xi32>
    %c0_i32_11 = arith.constant 0 : i32
    %22 = arith.cmpi slt, %15, %c0_i32_11 : i32
    %23 = vector.broadcast %22 : i1 to vector<16x32xi1>
    %24 = vector.broadcast %23 : vector<16x32xi1> to vector<16x32xi1>
    %25 = arith.xori %21, %24 : vector<16x32xi1>
    %26 = arith.andi %25, %19 : vector<16x32xi1>
    %27 = vector.broadcast %15 : i32 to vector<16x32xi32>
    %28 = arith.addi %17, %27 : vector<16x32xi32>
    %29 = arith.select %26, %28, %17 : vector<16x32xi1>, vector<16x32xi32>
    %c2_i32_12 = arith.constant 2 : i32
    %30 = vector.broadcast %c2_i32_12 : i32 to vector<16x32xi32>
    %31 = arith.cmpi sge, %29, %30 : vector<16x32xi32>
    %c30_i32 = arith.constant 30 : i32
    %32 = vector.broadcast %c30_i32 : i32 to vector<16x32xi32>
    %33 = arith.cmpi slt, %29, %32 : vector<16x32xi32>
    %34 = arith.andi %31, %33 : vector<16x32xi1>
    %c2_i32_13 = arith.constant 2 : i32
    %35 = vector.broadcast %c2_i32_13 : i32 to vector<16x32xi32>
    %36 = arith.cmpi sge, %10, %35 : vector<16x32xi32>
    %37 = arith.andi %34, %36 : vector<16x32xi1>
    %c30_i32_14 = arith.constant 30 : i32
    %38 = vector.broadcast %c30_i32_14 : i32 to vector<16x32xi32>
    %39 = arith.cmpi slt, %10, %38 : vector<16x32xi32>
    %40 = arith.andi %37, %39 : vector<16x32xi1>
    %41 = arith.extui %40 : vector<16x32xi1> to vector<16x32xi32>
    %42 = arith.sitofp %41 : vector<16x32xi32> to vector<16x32xf32>
    %43 = arith.subf %7, %8 : vector<16x32xf32>
    %cst = arith.constant 5.000000e-02 : f32
    %44 = vector.broadcast %cst : f32 to vector<16x32xf32>
    %45 = arith.cmpf olt, %43, %44 : vector<16x32xf32>
    %46 = arith.extui %45 : vector<16x32xi1> to vector<16x32xi32>
    %47 = arith.sitofp %46 : vector<16x32xi32> to vector<16x32xf32>
    %48 = arith.mulf %42, %47 : vector<16x32xf32>
    %49 = arith.subf %7, %6 : vector<16x32xf32>
    %cst_15 = arith.constant 5.000000e-02 : f32
    %50 = vector.broadcast %cst_15 : f32 to vector<16x32xf32>
    %51 = arith.cmpf olt, %49, %50 : vector<16x32xf32>
    %52 = arith.extui %51 : vector<16x32xi1> to vector<16x32xi32>
    %53 = arith.sitofp %52 : vector<16x32xi32> to vector<16x32xf32>
    %54 = arith.mulf %42, %53 : vector<16x32xf32>
    %55 = arith.subf %5, %8 : vector<16x32xf32>
    %56 = arith.subf %6, %7 : vector<16x32xf32>
    %c0_16 = arith.constant 0 : index
    %c0_17 = arith.constant 0 : index
    %57 = vector.load %arg7[%c0_16, %c0_17] : memref<16x32xf32, #tpu.memory_space<vmem>>, vector<16x32xf32>
    %58 = arith.mulf %55, %55 : vector<16x32xf32>
    %59 = arith.mulf %58, %48 : vector<16x32xf32>
    %60 = arith.addf %57, %59 : vector<16x32xf32>
    %c0_18 = arith.constant 0 : index
    %c0_19 = arith.constant 0 : index
    %61 = vector.load %arg7[%c0_18, %c0_19] : memref<16x32xf32, #tpu.memory_space<vmem>>, vector<16x32xf32>
    tpu.vector_store %arg7[%c0_18, %c0_19], %60 {strides = array<i32>} : memref<16x32xf32, #tpu.memory_space<vmem>>, vector<16x32xf32>,
    %c0_20 = arith.constant 0 : index
    %c0_21 = arith.constant 0 : index
    %62 = vector.load %arg8[%c0_20, %c0_21] : memref<16x32xf32, #tpu.memory_space<vmem>>, vector<16x32xf32>
    %63 = arith.addf %62, %48 : vector<16x32xf32>
    %c0_22 = arith.constant 0 : index
    %c0_23 = arith.constant 0 : index
    %64 = vector.load %arg8[%c0_22, %c0_23] : memref<16x32xf32, #tpu.memory_space<vmem>>, vector<16x32xf32>
    tpu.vector_store %arg8[%c0_22, %c0_23], %63 {strides = array<i32>} : memref<16x32xf32, #tpu.memory_space<vmem>>, vector<16x32xf32>,
    %c0_24 = arith.constant 0 : index
    %c0_25 = arith.constant 0 : index
    %65 = vector.load %arg9[%c0_24, %c0_25] : memref<16x32xf32, #tpu.memory_space<vmem>>, vector<16x32xf32>
    %66 = arith.mulf %56, %56 : vector<16x32xf32>
    %67 = arith.mulf %66, %54 : vector<16x32xf32>
    %68 = arith.addf %65, %67 : vector<16x32xf32>
    %c0_26 = arith.constant 0 : index
    %c0_27 = arith.constant 0 : index
    %69 = vector.load %arg9[%c0_26, %c0_27] : memref<16x32xf32, #tpu.memory_space<vmem>>, vector<16x32xf32>
    tpu.vector_store %arg9[%c0_26, %c0_27], %68 {strides = array<i32>} : memref<16x32xf32, #tpu.memory_space<vmem>>, vector<16x32xf32>,
    %c0_28 = arith.constant 0 : index
    %c0_29 = arith.constant 0 : index
    %70 = vector.load %arg10[%c0_28, %c0_29] : memref<16x32xf32, #tpu.memory_space<vmem>>, vector<16x32xf32>
    %71 = arith.addf %70, %54 : vector<16x32xf32>
    %c0_30 = arith.constant 0 : index
    %c0_31 = arith.constant 0 : index
    %72 = vector.load %arg10[%c0_30, %c0_31] : memref<16x32xf32, #tpu.memory_space<vmem>>, vector<16x32xf32>
    tpu.vector_store %arg10[%c0_30, %c0_31], %71 {strides = array<i32>} : memref<16x32xf32, #tpu.memory_space<vmem>>, vector<16x32xf32>,
    %c1_i32_32 = arith.constant 1 : i32
    %73 = arith.cmpi eq, %arg1, %c1_i32_32 : i32
    %74 = arith.extui %73 : i1 to i32
    %c0_i32_33 = arith.constant 0 : i32
    %75 = arith.cmpi ne, %74, %c0_i32_33 : i32
    scf.if %75 {
      %c0_34 = arith.constant 0 : index
      %c0_35 = arith.constant 0 : index
      %76 = vector.load %arg7[%c0_34, %c0_35] : memref<16x32xf32, #tpu.memory_space<vmem>>, vector<16x32xf32>
      %77 = vector.shape_cast %76 : vector<16x32xf32> to vector<1x16x32xf32>
      %cst_36 = arith.constant dense<0.000000e+00> : vector<1xf32>
      %78 = vector.multi_reduction <add>, %77, %cst_36 [1, 2] : vector<1x16x32xf32> to vector<1xf32>
      %79 = vector.shape_cast %78 : vector<1xf32> to vector<1x1x1xf32>
      %80 = vector.extract %79[0, 0, 0] : f32 from vector<1x1x1xf32>
      %c0_37 = arith.constant 0 : index
      %c0_38 = arith.constant 0 : index
      %81 = vector.load %arg8[%c0_37, %c0_38] : memref<16x32xf32, #tpu.memory_space<vmem>>, vector<16x32xf32>
      %82 = vector.shape_cast %81 : vector<16x32xf32> to vector<1x16x32xf32>
      %cst_39 = arith.constant dense<0.000000e+00> : vector<1xf32>
      %83 = vector.multi_reduction <add>, %82, %cst_39 [1, 2] : vector<1x16x32xf32> to vector<1xf32>
      %84 = vector.shape_cast %83 : vector<1xf32> to vector<1x1x1xf32>
      %85 = vector.extract %84[0, 0, 0] : f32 from vector<1x1x1xf32>
      %c0_40 = arith.constant 0 : index
      %c0_41 = arith.constant 0 : index
      %86 = vector.load %arg9[%c0_40, %c0_41] : memref<16x32xf32, #tpu.memory_space<vmem>>, vector<16x32xf32>
      %87 = vector.shape_cast %86 : vector<16x32xf32> to vector<1x16x32xf32>
      %cst_42 = arith.constant dense<0.000000e+00> : vector<1xf32>
      %88 = vector.multi_reduction <add>, %87, %cst_42 [1, 2] : vector<1x16x32xf32> to vector<1xf32>
      %89 = vector.shape_cast %88 : vector<1xf32> to vector<1x1x1xf32>
      %90 = vector.extract %89[0, 0, 0] : f32 from vector<1x1x1xf32>
      %c0_43 = arith.constant 0 : index
      %c0_44 = arith.constant 0 : index
      %91 = vector.load %arg10[%c0_43, %c0_44] : memref<16x32xf32, #tpu.memory_space<vmem>>, vector<16x32xf32>
      %92 = vector.shape_cast %91 : vector<16x32xf32> to vector<1x16x32xf32>
      %cst_45 = arith.constant dense<0.000000e+00> : vector<1xf32>
      %93 = vector.multi_reduction <add>, %92, %cst_45 [1, 2] : vector<1x16x32xf32> to vector<1xf32>
      %94 = vector.shape_cast %93 : vector<1xf32> to vector<1x1x1xf32>
      %95 = vector.extract %94[0, 0, 0] : f32 from vector<1x1x1xf32>
      %96 = tpu.iota {dimensions = array<i32: 1>} : vector<8x128xi32>
      %c0_i32_46 = arith.constant 0 : i32
      %97 = vector.broadcast %c0_i32_46 : i32 to vector<8x128xi32>
      %98 = arith.cmpi eq, %96, %97 : vector<8x128xi32>
      %c1_i32_47 = arith.constant 1 : i32
      %99 = vector.broadcast %c1_i32_47 : i32 to vector<8x128xi32>
      %100 = arith.cmpi eq, %96, %99 : vector<8x128xi32>
      %c2_i32_48 = arith.constant 2 : i32
      %101 = vector.broadcast %c2_i32_48 : i32 to vector<8x128xi32>
      %102 = arith.cmpi eq, %96, %101 : vector<8x128xi32>
      %c3_i32 = arith.constant 3 : i32
      %103 = vector.broadcast %c3_i32 : i32 to vector<8x128xi32>
      %104 = arith.cmpi eq, %96, %103 : vector<8x128xi32>
      %cst_49 = arith.constant 0.000000e+00 : f32
      %105 = vector.broadcast %95 : f32 to vector<8x128xf32>
      %106 = vector.broadcast %cst_49 : f32 to vector<8x128xf32>
      %107 = arith.select %104, %105, %106 : vector<8x128xi1>, vector<8x128xf32>
      %108 = vector.broadcast %90 : f32 to vector<8x128xf32>
      %109 = arith.select %102, %108, %107 : vector<8x128xi1>, vector<8x128xf32>
      %110 = vector.broadcast %85 : f32 to vector<8x128xf32>
      %111 = arith.select %100, %110, %109 : vector<8x128xi1>, vector<8x128xf32>
      %112 = vector.broadcast %80 : f32 to vector<8x128xf32>
      %113 = arith.select %98, %112, %111 : vector<8x128xi1>, vector<8x128xf32>
      %c0_50 = arith.constant 0 : index
      %c0_51 = arith.constant 0 : index
      %c0_52 = arith.constant 0 : index
      %114 = vector.load %arg6[%c0_50, %c0_51, %c0_52] : memref<1x8x128xf32, #tpu.memory_space<vmem>>, vector<1x8x128xf32>
      %115 = vector.shape_cast %114 : vector<1x8x128xf32> to vector<8x128xf32>
      %116 = vector.shape_cast %113 : vector<8x128xf32> to vector<1x8x128xf32>
      tpu.vector_store %arg6[%c0_50, %c0_51, %c0_52], %116 {strides = array<i32>} : memref<1x8x128xf32, #tpu.memory_space<vmem>>, vector<1x8x128xf32>,
    } else {
    }
    return
  }
  func.func @transform_0(%arg0: i32, %arg1: i32) -> (i32, i32) {
    %c2_i32 = arith.constant 2 : i32
    %0 = arith.muli %arg0, %c2_i32 : i32
    %1 = arith.addi %0, %arg1 : i32
    %c0_i32 = arith.constant 0 : i32
    %c0_i32_0 = arith.constant 0 : i32
    return %1, %c0_i32 : i32, i32
  }
  func.func @transform_1(%arg0: i32, %arg1: i32) -> (i32, i32) {
    %c2_i32 = arith.constant 2 : i32
    %0 = arith.muli %arg0, %c2_i32 : i32
    %1 = arith.addi %0, %arg1 : i32
    %c0_i32 = arith.constant 0 : i32
    %c0_i32_0 = arith.constant 0 : i32
    return %1, %c0_i32 : i32, i32
  }
  func.func @transform_2(%arg0: i32, %arg1: i32) -> (i32, i32) {
    %c2_i32 = arith.constant 2 : i32
    %0 = arith.muli %arg0, %c2_i32 : i32
    %1 = arith.addi %0, %arg1 : i32
    %c0_i32 = arith.constant 0 : i32
    %c0_i32_0 = arith.constant 0 : i32
    return %1, %c0_i32 : i32, i32
  }
  func.func @transform_3(%arg0: i32, %arg1: i32) -> (i32, i32) {
    %c2_i32 = arith.constant 2 : i32
    %0 = arith.muli %arg0, %c2_i32 : i32
    %1 = arith.addi %0, %arg1 : i32
    %c0_i32 = arith.constant 0 : i32
    %c0_i32_0 = arith.constant 0 : i32
    return %1, %c0_i32 : i32, i32
  }
  func.func @transform_4(%arg0: i32, %arg1: i32) -> (i32, i32, i32) {
    %c0_i32 = arith.constant 0 : i32
    %c0_i32_0 = arith.constant 0 : i32
    %c0_i32_1 = arith.constant 0 : i32
    return %arg0, %c0_i32, %c0_i32_0 : i32, i32, i32
  }
}

</mosaic_0001>

<bundles_post_ra>
// kernel: tpu_custom_call.1
= control target key start
LH: loop header
LB: loop body
LE: loop exit
PB: predicated region body
PF: predicated region fallthrough
CT: control target
= control target key end

     0   :  { %9 = vsyncpa [#allocation7], 0  ;;  %s1115_s0 = inlined_call_operand.vmem [shape: f32[64,32], index: 0, kind: input, shape index: {}]   ;;  %s1116_s1 = inlined_call_operand.vmem [shape: f32[64,32], index: 1, kind: input, shape index: {}]   ;;  %s1117_s2 = inlined_call_operand.vmem [shape: f32[64,32], index: 2, kind: input, shape index: {}]   ;;  %s1118_s3 = inlined_call_operand.vmem [shape: f32[64,32], index: 3, kind: input, shape index: {}]   ;;  %s1119_s4 = inlined_call_operand.hbm [shape: f32[2,8,128], index: 4, kind: output, shape index: {}]  }
   0x1   :  { %11 = vsyncpa [#allocation7 + $0x1], 0  ;;  %s901_s15 = smov 0   ;;  %s903_s16 = smov 0  }
   0x2   :  { %s905_s17 = smov 0   ;;  %s907_s18 = smov 0  }
   0x3   :  { %s909_s19 = smov 0   ;;  %s911_s20 = smov 0  }
   0x4   :  { %s913_s21 = smov 0   ;;  %s915_s22 = smov 0  }
   0x5 LB: > { %1123 = sst [smem:[#allocation9_spill]] %s867_s21  ;;  %s654_s23 = sadd.s32 4294967295, %s871_s22   ;;  %s871_s22 = sphi %s915_s22, %s17_s22   ;;  %s867_s21 = sphi %s913_s21, %s1137_s21   ;;  %s863_s20 = sphi %s911_s20, %s1142_s20   ;;  %s859_s19 = sphi %s909_s19, %s1135_s19   ;;  %s855_s18 = sphi %s907_s18, %s1141_s18   ;;  %s851_s17 = sphi %s905_s17, %s1140_s17   ;;  %s847_s16 = sphi %s903_s16, %s1139_s16   ;;  %s843_s15 = sphi %s901_s15, %s1138_s15  }
   0x6   : > { %s655_s24 = sadd.s32 4294967294, %s871_s22   ;;  %s26_s25 = sadd.s32 1, %s863_s20 }
   0x7   : > { %p27_p0 = scmp.ge.s32.totalorder %s26_s25, 2  ;;  %s29_s26 = sadd.s32 1, %s867_s21 }
   0x8   : > { %p166_p1 = scmp.ne.s32.totalorder %s851_s17, %s847_s16  ;;  %p167_p2 = scmp.eq.s32.totalorder %s654_s23, 3 }
   0x9   : > { %s1144_s25 = smov (%p27_p0, %s26_s25), 0  ;;  %s1146_s26 = smov (!%p27_p0, %s29_s26), %s867_s21 }
   0xa   : > { %1124 = sst [smem:[#allocation10_spill]] %s1144_s25  ;;  %p950_p3 = por %p167_p2, %p166_p1 }
   0xb   : > { %p172_p4 = scmp.ne.s32.totalorder %s847_s16, %s843_s15  ;;  %p31_p5 = scmp.ge.s32.totalorder %s1146_s26, 2 }
   0xc   : > { %p173_p6 = scmp.eq.s32.totalorder %s655_s24, 3  ;;  %p666_p7 = scmp.ge.s32.totalorder %s871_s22, 1 }
   0xd   : > { %p243_p8 = scmp.lt.s32.totalorder %s871_s22, 5  ;;  %s1148_s26 = smov (%p31_p5, %s1146_s26), 0 }
   0xe   : > { %1126 = sst [smem:[#allocation11_spill]] %s1148_s26  ;;  %p960_p9 = por %p173_p6, %p172_p4 }
   0xf   : > { %p244_p10 = pnand %p666_p7, %p243_p8  ;;  %s153_s29 = ssub.s32 %s867_s21, %s1148_s26 }
  0x10   : > { %s156_s30 = sadd.s32 1, %s851_s17  ;;  %p154_p11 = scmp.eq.s32.totalorder %s153_s29, 0 }
  0x11   : > { %247 = sbr.rel (%p244_p10) target bundleno = 316 (0x13c), region = 36  ;;  %s1121_s6 = sand.u32 (!%p244_p10), 1, %s847_s16  }
  0x12   : > { %s968_s5 = scalar_select %p154_p11, %s851_s17, %s156_s30  }
  0x13   : > { %s668_s7 = sshll.u32 (!%p244_p10), %s859_s19, 1  ;;  %s974_s8 = sshll.u32 (!%p244_p10), %s1121_s6, 3 }
  0x14   : > { %s293_s9 = sadd.s32 (!%p244_p10), %s855_s18, %s668_s7  ;;  %p681_p13 = scmp.ne.s32.totalorder (!%p244_p10), %s855_s18, 0 }
  0x15   : > { %s669_s10 = sshll.u32 (!%p244_p10), %s293_s9, 1 }
  0x16   : > { %p295_p12 = scmp.lt.s32.totalorder (!%p244_p10), %s669_s10, 7 }
  0x18   : > { %s1150_s10 = smov (!%p295_p12, %s669_s10), 7  ;;  %337 = sbr.rel (%p681_p13) target bundleno = 31 (0x1f), region = 40 }
  0x19   : > { %s670_s11 = sshll.u32 %s1150_s10, 3  ;;  %s291_s10 = scalar_lea.vmem [#allocation6], %s974_s8  ;;  %vm338_vm0 = vcmask (!%p681_p13), 261120   ;;  %v873_v0 = vmov (!%p681_p13), 0.0  }
  0x1a   : > { %s980_s14 = scalar_lea.vmem %s1115_s0, %s670_s11  ;;  %s985_s29 = scalar_lea.vmem %s1116_s1, %s670_s11  ;;  %339 = vst.msk [vmem:[#allocation2] sm:$0xff] (!%p681_p13), %vm338_vm0, %v873_v0  ;;  %340 = vst.msk [vmem:[#allocation2 + $0x8] sm:$0xff] (!%p681_p13), %vm338_vm0, %v873_v0 }
  0x1b   : > { %s990_s6 = scalar_lea.vmem %s1117_s2, %s670_s11  ;;  %s995_s21 = scalar_lea.vmem %s1118_s3, %s670_s11  ;;  %341 = vst.msk [vmem:[#allocation3] sm:$0xff] (!%p681_p13), %vm338_vm0, %v873_v0  ;;  %342 = vst.msk [vmem:[#allocation3 + $0x8] sm:$0xff] (!%p681_p13), %vm338_vm0, %v873_v0 }
  0x1c   : > { %343 = vst.msk [vmem:[#allocation4] sm:$0xff] (!%p681_p13), %vm338_vm0, %v873_v0  ;;  %344 = vst.msk [vmem:[#allocation4 + $0x8] sm:$0xff] (!%p681_p13), %vm338_vm0, %v873_v0 }
  0x1d   : > { %345 = vst.msk [vmem:[#allocation5] sm:$0xff] (!%p681_p13), %vm338_vm0, %v873_v0  ;;  %346 = vst.msk [vmem:[#allocation5 + $0x8] sm:$0xff] (!%p681_p13), %vm338_vm0, %v873_v0 }
  0x1f PF: > { %v355_v1 = vlaneseq  ;;  %s682_s25 = sshll.u32 %s293_s9, 4  ;;  %v351_v8 = vld [vmem:[%s990_s6] sm:$0xff]  ;;  %v352_v18 = vld [vmem:[%s990_s6 + $0x8] sm:$0xff]  ;;  %v874_v38 = vmov 0.0   ;;  %p691_p0 = scmp.ne.s32.totalorder %s855_s18, 1 }
  0x20   : > { %v361_v2 = vstv %s682_s25  ;;  %v353_v9 = vld [vmem:[%s995_s21] sm:$0xff]  ;;  %v354_v19 = vld [vmem:[%s995_s21 + $0x8] sm:$0xff] }
  0x21   : > { %v356_v3 = vshrl.u32 %v355_v1, 7  ;;  %v349_v12 = vld [vmem:[%s985_s29] sm:$0xff]  ;;  %v404_v15 = vsub.f32 %v351_v8, %v353_v9  ;;  %v1003_v17 = vand.u32 127, %v355_v1  ;;  %v350_v24 = vld [vmem:[%s985_s29 + $0x8] sm:$0xff]  ;;  %v405_v28 = vsub.f32 %v352_v18, %v354_v19 }
  0x22   : > { %v347_v13 = vld [vmem:[%s980_s14] sm:$0xff]  ;;  %v414_v22 = vsub.f32 %v351_v8, %v349_v12  ;;  %v348_v30 = vld [vmem:[%s980_s14 + $0x8] sm:$0xff]  ;;  %v426_v33 = vsub.f32 %v349_v12, %v351_v8  ;;  %v415_v34 = vsub.f32 %v352_v18, %v350_v24  ;;  %v427_v42 = vsub.f32 %v350_v24, %v352_v18  ;;  %v439_v47 = vld [vmem:[#allocation3] sm:$0xff] }
  0x23   : > { %v357_v4 = vadd.s32 8, %v356_v3  ;;  %v362_v5 = vadd.s32 %v361_v2, %v356_v3  ;;  %v424_v23 = vsub.f32 %v347_v13, %v353_v9  ;;  %vm1008_vm3 = vcmp.lt.f32.partialorder %v404_v15, 0.05  ;;  %v428_v53 = vld [vmem:[#allocation2] sm:$0xff]  ;;  %v440_v60 = vld [vmem:[#allocation3 + $0x8] sm:$0xff]  ;;  %v429_v3 = vld [vmem:[#allocation2 + $0x8] sm:$0xff] }
  0x24   : > { %vm394_vm6 = vcmp.ge.s32.totalorder %v1003_v17, 2  ;;  %vm1014_vm8 = vcmp.lt.f32.partialorder %v414_v22, 0.05  ;;  %vm397_vm13 = vcmp.lt.s32.totalorder %v1003_v17, 30  ;;  %v425_v37 = vsub.f32 %v348_v30, %v354_v19  ;;  %v455_v52 = vld [vmem:[#allocation5] sm:$0xff]  ;;  %v445_v55 = vld [vmem:[#allocation4] sm:$0xff] }
  0x25   : > { %v363_v6 = vadd.s32 %v361_v2, %v357_v4  ;;  %v365_v7 = vsub.s32 0, %v362_v5  ;;  %vm364_vm1 = vcmp.lt.s32.totalorder %v362_v5, 0  ;;  %v687_v39 = vsel %vm1008_vm3, 1.0, %v874_v38  ;;  %v456_v62 = vld [vmem:[#allocation5 + $0x8] sm:$0xff] }
  0x26   : > { %vm1021_vm0 = vcmp.lt.f32.partialorder %v405_v28, 0.05  ;;  %v689_v43 = vsel %vm1014_vm8, 1.0, %v874_v38  ;;  %v430_v44 = vmul.f32 %v424_v23, %v424_v23  ;;  %v447_v45 = vmul.f32 %v426_v33, %v426_v33 }
  0x27   : > { %v683_v10 = vmin.u32 %v365_v7, %v362_v5  ;;  %v372_v11 = vsub.s32 0, %v363_v6  ;;  %vm371_vm2 = vcmp.lt.s32.totalorder %v363_v6, 0  ;;  %v688_v49 = vsel %vm1021_vm0, 1.0, %v874_v38  ;;  %v446_v5 = vld [vmem:[#allocation4 + $0x8] sm:$0xff] }
  0x28   : > { %vm436_vm8 = vcmask 261120   ;;  %v431_v54 = vmul.f32 %v425_v37, %v425_v37  ;;  %v448_v56 = vmul.f32 %v427_v42, %v427_v42 }
  0x29   : > { %v368_v14 = vand.u32 31, %v683_v10  ;;  %v684_v16 = vmin.u32 %v372_v11, %v363_v6 }
  0x2b   : > { %v369_v20 = vsub.s32 0, %v368_v14  ;;  %v375_v21 = vand.u32 31, %v684_v16 }
  0x2d   : > { %v370_v25 = vsel %vm364_vm1, %v369_v20, %v368_v14  ;;  %v376_v27 = vsub.s32 0, %v375_v21 }
  0x2e   : > { %vm378_vm4 = vcmp.ne.s32.totalorder %v370_v25, 0  ;;  %vm380_vm5 = vcmp.lt.s32.totalorder %v370_v25, 0  ;;  %v384_v29 = vadd.s32 32, %v370_v25 }
  0x2f   : > { %vm382_vm7 = vmand %vm380_vm5, %vm378_vm4  ;;  %v377_v31 = vsel %vm371_vm2, %v376_v27, %v375_v21  ;;  %vm417_vm5 = vcmp.lt.f32.partialorder %v415_v34, 0.05 }
  0x30   : > { %v386_v35 = vsel %vm382_vm7, %v384_v29, %v370_v25  ;;  %vm379_vm9 = vcmp.ne.s32.totalorder %v377_v31, 0  ;;  %vm381_vm10 = vcmp.lt.s32.totalorder %v377_v31, 0  ;;  %v385_v36 = vadd.s32 32, %v377_v31 }
  0x31   : > { %vm388_vm11 = vcmp.ge.s32.totalorder %v386_v35, 2  ;;  %vm390_vm12 = vcmp.lt.s32.totalorder %v386_v35, 30  ;;  %vm383_vm14 = vmand %vm381_vm10, %vm379_vm9  ;;  %v690_v51 = vsel %vm417_vm5, 1.0, %v874_v38 }
  0x32   : > { %vm392_vm15 = vmand %vm388_vm11, %vm390_vm12  ;;  %v387_v40 = vsel %vm383_vm14, %v385_v36, %v377_v31  ;;  %vm523_vm11 = vcmp.eq.s32.totalorder (!%p691_p0), %v1003_v17, 2  ;;  %vm522_vm12 = vcmp.eq.s32.totalorder (!%p691_p0), %v1003_v17, 1 }
  0x33   : > { %vm395_vm1 = vmand %vm392_vm15, %vm394_vm6  ;;  %vm389_vm2 = vcmp.ge.s32.totalorder %v387_v40, 2  ;;  %vm391_vm4 = vcmp.lt.s32.totalorder %v387_v40, 30 }
  0x34   : > { %vm398_vm7 = vmand %vm395_vm1, %vm397_vm13 }
  0x35   : > { %v685_v46 = vsel %vm398_vm7, 1.0, %v874_v38  ;;  %vm393_vm3 = vmand %vm389_vm2, %vm391_vm4 }
  0x36   : > { %v412_v48 = vmul.f32 %v687_v39, %v685_v46  ;;  %vm396_vm9 = vmand %vm393_vm3, %vm394_vm6  ;;  %v422_v50 = vmul.f32 %v689_v43, %v685_v46  ;;  %vm524_vm6 = vcmp.eq.s32.totalorder (!%p691_p0), %v1003_v17, 3 }
  0x37   : > { %vm399_vm10 = vmand %vm396_vm9, %vm397_vm13  ;;  %vm521_vm13 = vcmp.eq.s32.totalorder (!%p691_p0), %v1003_v17, 0 }
  0x38   : > { %v432_v57 = vmul.f32 %v430_v44, %v412_v48  ;;  %v686_v58 = vsel %vm399_vm10, 1.0, %v874_v38  ;;  %v441_v59 = vadd.f32 %v439_v47, %v412_v48  ;;  %v449_v61 = vmul.f32 %v447_v45, %v422_v50 }
  0x39   : > { %v413_v63 = vmul.f32 %v688_v49, %v686_v58  ;;  %v423_v0 = vmul.f32 %v690_v51, %v686_v58  ;;  %v457_v1 = vadd.f32 %v455_v52, %v422_v50  ;;  %464 = sbr.rel (%p691_p0) target bundleno = 291 (0x123), region = 44 }
  0x3a   : > { %v434_v2 = vadd.f32 %v432_v57, %v428_v53  ;;  %443 = vst.msk [vmem:[#allocation3] sm:$0xff] %vm436_vm8, %v441_v59  ;;  %v451_v4 = vadd.f32 %v449_v61, %v445_v55 }
  0x3b   : > { %v433_v6 = vmul.f32 %v431_v54, %v413_v63  ;;  %v442_v7 = vadd.f32 %v440_v60, %v413_v63  ;;  %v450_v8 = vmul.f32 %v448_v56, %v423_v0  ;;  %459 = vst.msk [vmem:[#allocation5] sm:$0xff] %vm436_vm8, %v457_v1  ;;  %v458_v9 = vadd.f32 %v456_v62, %v423_v0 }
  0x3c   : > { %437 = vst.msk [vmem:[#allocation2] sm:$0xff] %vm436_vm8, %v434_v2  ;;  %453 = vst.msk [vmem:[#allocation4] sm:$0xff] %vm436_vm8, %v451_v4 }
  0x3d   : > { %v435_v10 = vadd.f32 %v433_v6, %v429_v3  ;;  %444 = vst.msk [vmem:[#allocation3 + $0x8] sm:$0xff] %vm436_vm8, %v442_v7  ;;  %v452_v11 = vadd.f32 %v450_v8, %v446_v5  ;;  %460 = vst.msk [vmem:[#allocation5 + $0x8] sm:$0xff] %vm436_vm8, %v458_v9 }
  0x3f   : > { %438 = vst.msk [vmem:[#allocation2 + $0x8] sm:$0xff] %vm436_vm8, %v435_v10  ;;  %454 = vst.msk [vmem:[#allocation4 + $0x8] sm:$0xff] %vm436_vm8, %v452_v11 }
  0x41   : > { %v479_v26 = vld [vmem:[#allocation3] sm:$0xff] }
  0x42   : > { %v507_v20 = vld [vmem:[#allocation5] sm:$0xff]  ;;  %v481_v29 = vsel %vm436_vm8, %v479_v26, 0.0 }
  0x43   : > { %v493_v12 = vld [vmem:[#allocation4] sm:$0xff]  ;;  %v509_v24 = vsel %vm436_vm8, %v507_v20, 0.0 }
  0x44   : > { %v465_v14 = vld [vmem:[#allocation2] sm:$0xff]  ;;  %v495_v15 = vsel %vm436_vm8, %v493_v12, 0.0  ;;  %v508_v21 = vld [vmem:[#allocation5 + $0x8] sm:$0xff] }
  0x45   : > { %v467_v19 = vsel %vm436_vm8, %v465_v14, 0.0  ;;  %v510_v25 = vsel %vm436_vm8, %v508_v21, 0.0  ;;  %v480_v27 = vld [vmem:[#allocation3 + $0x8] sm:$0xff] }
  0x46   : > { %v494_v13 = vld [vmem:[#allocation4 + $0x8] sm:$0xff]  ;;  %v482_v30 = vsel %vm436_vm8, %v480_v27, 0.0  ;;  %v511_v31 = vadd.f32 %v510_v25, %v509_v24 }
  0x47   : > { %v496_v16 = vsel %vm436_vm8, %v494_v13, 0.0  ;;  %v466_v18 = vld [vmem:[#allocation2 + $0x8] sm:$0xff]  ;;  %v483_v32 = vadd.f32 %v482_v30, %v481_v29 }
  0x48   : > { %v497_v22 = vadd.f32 %v496_v16, %v495_v15  ;;  %v468_v23 = vsel %vm436_vm8, %v466_v18, 0.0 }
  0x49   : > { %v469_v28 = vadd.f32 %v468_v23, %v467_v19 }
  0x4a   : > { %498 = vadd.xlane.f32.xlu1 %v497_v22 }
  0x4b   : > { %470 = vadd.xlane.f32.xlu0 %v469_v28 }
  0x4e   : > { %512 = vadd.xlane.f32.xlu1 %v511_v31 }
  0x4f   : > { %484 = vadd.xlane.f32.xlu0 %v483_v32 }
  0xd7   : > { %v499_v33 = vpop.xlane.xlu1 %498 }
  0xd8   : > { %v500_v34 = vrot.slane %v499_v33, 4  ;;  %v471_v35 = vpop.xlane.xlu0 %470 }
  0xd9   : > { %v472_v36 = vrot.slane %v471_v35, 4 }
  0xda   : > { %v501_v37 = vadd.f32 %v500_v34, %v499_v33 }
  0xdb   : > { %v473_v38 = vadd.f32 %v472_v36, %v471_v35  ;;  %v513_v39 = vpop.xlane.xlu1 %512 }
  0xdc   : > { %v502_v40 = vrot.slane %v501_v37, 2  ;;  %v514_v41 = vrot.slane %v513_v39, 4  ;;  %v485_v42 = vpop.xlane.xlu0 %484 }
  0xdd   : > { %v474_v43 = vrot.slane %v473_v38, 2  ;;  %v486_v44 = vrot.slane %v485_v42, 4 }
  0xde   : > { %v515_v45 = vadd.f32 %v514_v41, %v513_v39  ;;  %v503_v49 = vadd.f32 %v502_v40, %v501_v37 }
  0xdf   : > { %v487_v46 = vadd.f32 %v486_v44, %v485_v42  ;;  %v475_v47 = vadd.f32 %v474_v43, %v473_v38 }
  0xe0   : > { %v516_v48 = vrot.slane %v515_v45, 2  ;;  %v504_v55 = vrot.slane %v503_v49, 1 }
  0xe1   : > { %v488_v50 = vrot.slane %v487_v46, 2  ;;  %v476_v51 = vrot.slane %v475_v47, 1 }
  0xe2   : > { %v517_v52 = vadd.f32 %v516_v48, %v515_v45  ;;  %v505_v60 = vadd.f32 %v504_v55, %v503_v49 }
  0xe3   : > { %v489_v53 = vadd.f32 %v488_v50, %v487_v46  ;;  %v477_v54 = vadd.f32 %v476_v51, %v475_v47 }
  0xe4   : > { %v518_v56 = vrot.slane %v517_v52, 1 }
  0xe5   : > { %696 = vpush %v477_v54  ;;  %v490_v57 = vrot.slane %v489_v53, 1 }
  0xe6   : > { %v519_v59 = vadd.f32 %v518_v56, %v517_v52 }
  0xe7   : > { %v491_v58 = vadd.f32 %v490_v57, %v489_v53 }
  0xe9   : > { %698 = vpush %v491_v58 }
  0xea   : > { %700 = vpush %v505_v60 }
  0xeb   : > { %702 = vpush %v519_v59 }
 0x116   : > { %s697_s18 = spop %696 }
 0x117   : > { %v531_v2 = vstv %s697_s18 }
 0x11a   : > { %s699_s21 = spop %698 }
 0x11b   : > { %s701_s26 = spop %700  ;;  %v529_v0 = vstv %s699_s21 }
 0x11c   : > { %v527_v61 = vstv %s701_s26  ;;  %s703_s6 = spop %702 }
 0x11d   : > { %v525_v62 = vstv %s703_s6 }
 0x11e   : > { %v526_v63 = vsel %vm524_vm6, %v525_v62, 0.0 }
 0x11f   : > { %v528_v1 = vsel %vm523_vm11, %v527_v61, %v526_v63 }
 0x120   : > { %v530_v3 = vsel %vm522_vm12, %v529_v0, %v528_v1 }
 0x121   : > { %v532_v4 = vsel %vm521_vm13, %v531_v2, %v530_v3 }
 0x122   : > { %533 = vst [vmem:[%s291_s10] sm:$0xff] %v532_v4 }
 0x123 PF: > { %s693_s9 = sshll.u32 %s859_s19, 7  ;;  %s548_s14 = sshll.u32 %s291_s10, 4  ;;  %s549_s14 = int_to_ptr.vmem [resolvable:$true] %s548_s14 }
 0x124   : > { %s1064_s13 = scalar_lea.hbm %s1119_s4, %s693_s9  ;;  %s1134_s23 = sand.u32 1, %s847_s16  }
 0x125   : > { %s535_s24 = scalar_lea.sflag [#allocation7], %s1134_s23  ;;  %s777_s29 = scalar_lea.vmem %s549_s14, 128 }
 0x126   : > { %p778_p1 = scmp.ne.s32.totalorder %s549_s14, %s777_s29  ;;  %s875_s30 = smov [#allocation6]  }
 0x127   : > { %s781_s7 = sshll.u32 %s875_s30, 4  ;;  %s782_s7 = int_to_ptr.vmem [resolvable:$false] %s781_s7 }
 0x128   : > { %p779_p2 = pnand %p778_p1, %p950_p3  ;;  %s783_s25 = scalar_lea.vmem %s782_s7, 256 }
 0x129   : > { %p784_p5 = scmp.lt.s32.totalorder %s549_s14, %s782_s7  ;;  %p785_p6 = scmp.lt.s32.totalorder %s783_s25, %s777_s29 }
 0x12a   : > { %p780_p4 = pneg %p779_p2 }
 0x12b   : > { %p786_p7 = por %p785_p6, %p784_p5 }
 0x12d   : > { %p787_p8 = pnand %p786_p7, %p780_p4 }
 0x12f   : > { %790 = shalt.err (!%p787_p8)
}
 0x130   : > { %s791_s19 = scalar_lea.hbm %s1064_s13, 128  ;;  %s795_s18 = scalar_lea.hbm %s1119_s4, 256 }
 0x131   : > { %p792_p10 = scmp.ne.s32.totalorder %s1064_s13, %s791_s19  ;;  %p796_p13 = scmp.lt.u32.totalorder %s1064_s13, %s1119_s4 }
 0x132   : > { %p797_p0 = scmp.lt.u32.totalorder %s795_s18, %s791_s19  ;;  %p799_p2 = scmp.lt.u32.totalorder %s791_s19, %s1064_s13 }
 0x133   : > { %p793_p11 = pnand %p792_p10, %p950_p3 }
 0x134   : > { %p798_p1 = por %p797_p0, %p796_p13 }
 0x135   : > { %p794_p12 = pneg %p793_p11 }
 0x136   : > { %p800_p4 = por %p799_p2, %p798_p1 }
 0x138   : > { %p801_p5 = pnand %p800_p4, %p794_p12 }
 0x13a   : > { %804 = shalt.err (!%p801_p5)
}
 0x13b   : > { %704 = dma.vmem_to_hbm [thread:$0]  (%p950_p3), %s549_s14, 128, %s1064_s13, %s535_s24  }
 0x13c PF: > { %p710_p6 = scmp.ge.s32.totalorder %s871_s22, 2  ;;  %s560_s6 = sand.u32 1, %s843_s15  }
 0x13d   : > { %s561_s9 = scalar_lea.sflag [#allocation7], %s560_s6 }
 0x13e   : > { %p707_p7 = pnand %p710_p6, %p960_p9 }
 0x140   : > { %838 = dma.done.wait (!%p707_p7), %s561_s9, 128  }
 0x141   : > { %840 = vsyncadd (!%p707_p7), %s561_s9, 4294967168  ;;  %s17_s22 = sadd.s32 1, %s871_s22   ;;  %s1135_s19 = sld [smem:[#allocation9_spill]] }
 0x142   : > { %p14_p8 = scmp.ge.s32.totalorder %s17_s22, 6   ;;  %s1136_s27 = sld [smem:[#allocation10_spill]] }
 0x143   : > { %s1137_s21 = sld [smem:[#allocation11_spill]]  ;;  %s1138_s15 = smov %s847_s16 }
 0x144   : > { %s1139_s16 = smov %s851_s17  ;;  %s1140_s17 = smov %s968_s5 }
 0x145   : > { %s1141_s18 = smov %s863_s20  ;;  %16 = sbr.rel (!%p14_p8) target bundleno = 5 (0x5), region = 88 }
 0x148   : > { %s1142_s20 = smov %s1136_s27 }
 0x14c   :  { %566 = vsyncpa [#allocation7], 1 }
 0x14d   :  { %568 = vsyncpa [#allocation7 + $0x1], 1 }

</bundles_post_ra>
